<compile_context>
chip_gen: v5e
topology: v5e:2x2
jax: 0.10.0
libtpu: 0.0.40
codegen_flags: <defaults>
</compile_context>

<pallas_src>
import jax
import jax.numpy as jnp
from jax import lax
from jax.experimental import pallas as pl
from jax.experimental.pallas import tpu as pltpu


def _self_attention_kernel(g_ref, w_ref, b_ref, o_ref):
    # g_ref: (B*T, H) bf16  — stacked & flattened inputs (batch-major rows)
    # w_ref: (H, 4H)  bf16  — [Ww | Wq/sqrt(H) | Wk | Wv], each in (in, out) layout
    # b_ref: (1, 4H)  f32   — [bw | bq/sqrt(H) | bk | bv]
    # o_ref: (B, T, H) f32
    B, T, H = o_ref.shape
    f32, bf16 = jnp.float32, jnp.bfloat16

    w_all = w_ref[...]                                   # (H, 4H) bf16
    b_all = b_ref[...]                                   # (1, 4H) f32

    # x = w(G): one (B*T, H) @ (H, H) MXU matmul, f32 accumulation + f32 bias.
    x = jnp.dot(g_ref[...], w_all[:, :H], preferred_element_type=f32) + b_all[:, :H]

    # Fused q|k|v: one (B*T, H) @ (H, 3H) MXU matmul.
    qkv = jnp.dot(x.astype(bf16), w_all[:, H:], preferred_element_type=f32) + b_all[:, H:]

    # Per-batch scores s_b = k_b @ q_b^T (1/sqrt(H) already folded into Wq / bq).
    # B is tiny, so a static unroll is fine; the hidden (lane) axis is contracted
    # directly — no explicit transpose.
    scores, vs = [], []
    for b in range(B):                                   # static unroll, B small
        blk = qkv[b * T:(b + 1) * T, :]                  # (T, 3H) static slice
        q_b = blk[:, 0:H].astype(bf16)
        k_b = blk[:, H:2 * H].astype(bf16)
        vs.append(blk[:, 2 * H:3 * H])                   # keep v in f32
        scores.append(lax.dot_general(k_b, q_b, (((1,), (1,)), ((), ())),
                                      preferred_element_type=f32))     # (T, T)

    # Numerically-stable softmax over the BATCH axis (dim=0), all f32 on the VPU.
    m = scores[0]
    for b in range(1, B):
        m = jnp.maximum(m, scores[b])
    es = [jnp.exp(s - m) for s in scores]
    denom = es[0]
    for b in range(1, B):
        denom = denom + es[b]
    inv = pl.reciprocal(denom, approx=True)              # EUP slot, VALU stays free

    # s_b = a_b @ v_b and store.
    for b in range(B):
        a_b = (es[b] * inv).astype(bf16)
        s_b = jnp.dot(a_b, vs[b].astype(bf16), preferred_element_type=f32)
        o_ref[b] = s_b.astype(o_ref.dtype)


@jax.jit
def self_attention_forward(g_list, w_packed, b_packed):
    """g_list: sequence of (B, H) arrays; w_packed: (H, 4H) bf16; b_packed: (1, 4H) f32."""
    G = jnp.stack(list(g_list), axis=1)                  # torch.stack(g_list, dim=1) -> (B, T, H)
    G = lax.stop_gradient(G)                             # G.detach() (forward no-op)
    B, T, H = G.shape
    # Flatten batch into the matmul row dim and cast MXU operands to bf16 in the
    # wrapper: keeps the kernel free of reshapes and halves the input DMA bytes.
    g_flat = G.reshape(B * T, H).astype(jnp.bfloat16)

    return pl.pallas_call(
        _self_attention_kernel,
        out_shape=jax.ShapeDtypeStruct((B, T, H), jnp.float32),
        in_specs=[
            pl.BlockSpec(memory_space=pltpu.MemorySpace.VMEM),   # g_flat
            pl.BlockSpec(memory_space=pltpu.MemorySpace.VMEM),   # packed weights
            pl.BlockSpec(memory_space=pltpu.MemorySpace.VMEM),   # packed biases
        ],
        out_specs=pl.BlockSpec(memory_space=pltpu.MemorySpace.VMEM),
        # NOTE(v7x, 64 MiB VMEM): whole problem is VMEM-resident.  If H grows past
        # ~1.4k, raise pltpu.CompilerParams(vmem_limit_bytes=...) or tile the
        # Linears' output dim with a grid; if B*T grows, add a "parallel" grid axis
        # over T to use both TensorCores.
    )(g_flat, w_packed, b_packed)


def init_params(key, hidden_size):
    """Mirror nn.Linear default init: U(-1/sqrt(in), 1/sqrt(in)).
    Weights are stored as (in, out) so every Linear is x @ W."""
    keys = jax.random.split(key, 8)
    bound = 1.0 / float(hidden_size) ** 0.5
    ws = [jax.random.uniform(keys[i], (hidden_size, hidden_size), jnp.float32,
                             minval=-bound, maxval=bound) for i in range(4)]
    bs = [jax.random.uniform(keys[4 + i], (hidden_size,), jnp.float32,
                             minval=-bound, maxval=bound) for i in range(4)]
    return ws, bs


def pack_params(ws, bs):
    """Pack [Ww, Wq, Wk, Wv] / [bw, bq, bk, bv] into the kernel layout:
       * fold the 1/sqrt(H) score scale into Wq / bq,
       * concatenate along the output axis -> (H, 4H) weights / (1, 4H) biases,
       * weights as bf16 MXU operands, biases stay f32 (added post-accumulation)."""
    H = ws[0].shape[0]
    scale = 1.0 / float(H) ** 0.5
    ww, wq, wk, wv = ws
    bw, bq, bk, bv = bs
    w_packed = jnp.concatenate([ww, wq * scale, wk, wv], axis=1).astype(jnp.bfloat16)
    b_packed = jnp.concatenate([bw, bq * scale, bk, bv]).reshape(1, 4 * H).astype(jnp.float32)
    return w_packed, b_packed


if __name__ == "__main__":
    key = jax.random.PRNGKey(0)
    k_g, k_p = jax.random.split(key)

    B, T, H = 2, 8, 32                                   # batch, len(g_list), hidden_size
    g_list = [jax.random.normal(jax.random.fold_in(k_g, t), (B, H), jnp.float32)
              for t in range(T)]
    ws, bs = init_params(k_p, H)
    w_packed, b_packed = pack_params(ws, bs)

    s_t = self_attention_forward(g_list, w_packed, b_packed)
    jax.block_until_ready(s_t)
    assert s_t.shape == (B, T, H), s_t.shape

    # --- Reference 1: module semantics in full f32 (Precision.HIGHEST). ---
    G = jnp.stack(g_list, axis=1)
    Ww, Wq, Wk, Wv = ws
    bw, bq, bk, bv = bs
    hp = lax.Precision.HIGHEST
    x = jnp.einsum('bth,hd->btd', G, Ww, precision=hp) + bw
    q = jnp.einsum('bth,hd->btd', x, Wq, precision=hp) + bq
    k = jnp.einsum('bth,hd->btd', x, Wk, precision=hp) + bk
    v = jnp.einsum('bth,hd->btd', x, Wv, precision=hp) + bv
    scores = jnp.einsum('bih,bjh->bij', k, q, precision=hp) / (H ** 0.5)
    a = jax.nn.softmax(scores, axis=0)                   # softmax over the BATCH dim, as in the module
    ref_f32 = jnp.einsum('bij,bjh->bih', a, v, precision=hp)

    # --- Reference 2: mirror of the kernel's bf16-operand / f32-accum math. ---
    f32, bf16 = jnp.float32, jnp.bfloat16
    g_flat = G.reshape(B * T, H).astype(bf16)
    xm = jnp.dot(g_flat, w_packed[:, :H], preferred_element_type=f32) + b_packed[:, :H]
    qkvm = jnp.dot(xm.astype(bf16), w_packed[:, H:], preferred_element_type=f32) + b_packed[:, H:]
    qm = qkvm[:, 0:H].reshape(B, T, H)
    km = qkvm[:, H:2 * H].reshape(B, T, H)
    vm = qkvm[:, 2 * H:].reshape(B, T, H)
    sm = jnp.einsum('bih,bjh->bij', km.astype(bf16), qm.astype(bf16),
                    preferred_element_type=f32)
    am = jax.nn.softmax(sm, axis=0)
    ref_bf16 = jnp.einsum('bij,bjh->bih', am.astype(bf16), vm.astype(bf16),
                          preferred_element_type=f32)

    err_sem = float(jnp.max(jnp.abs(s_t - ref_f32)))
    err_mir = float(jnp.max(jnp.abs(s_t - ref_bf16)))
    # Semantic check (bf16-MXU tolerance) and tight check vs the bf16-mirror math.
    assert jnp.allclose(s_t, ref_f32, atol=5e-2, rtol=5e-2), err_sem
    assert jnp.allclose(s_t, ref_bf16, atol=1e-2, rtol=1e-2), err_mir

    print("KERNEL_OK")
</pallas_src>

<mosaic_0001>
module attributes {stable_mosaic.version = 11 : i64} {
  func.func @_self_attention_kernel(%arg0: memref<16x32xbf16, #tpu.memory_space<vmem>>, %arg1: memref<32x128xbf16, #tpu.memory_space<vmem>>, %arg2: memref<1x128xf32, #tpu.memory_space<vmem>>, %arg3: memref<2x8x32xf32, #tpu.memory_space<vmem>>) attributes {dimension_semantics = [], scalar_prefetch = 0 : i64, scratch_operands = 0 : i64, tpu.core_type = #tpu.core_type<tc>} {
    %c0 = arith.constant 0 : index
    %c0_0 = arith.constant 0 : index
    %0 = vector.load %arg1[%c0, %c0_0] : memref<32x128xbf16, #tpu.memory_space<vmem>>, vector<32x128xbf16>
    %c0_1 = arith.constant 0 : index
    %c0_2 = arith.constant 0 : index
    %1 = vector.load %arg2[%c0_1, %c0_2] : memref<1x128xf32, #tpu.memory_space<vmem>>, vector<1x128xf32>
    %c0_3 = arith.constant 0 : index
    %c0_4 = arith.constant 0 : index
    %2 = vector.load %arg0[%c0_3, %c0_4] : memref<16x32xbf16, #tpu.memory_space<vmem>>, vector<16x32xbf16>
    %3 = vector.extract_strided_slice %0 {offsets = [0, 0], sizes = [32, 32], strides = [1, 1]} : vector<32x128xbf16> to vector<32x32xbf16>
    %cst = arith.constant dense<0.000000e+00> : vector<16x32xf32>
    %4 = tpu.matmul %2, %3, %cst {dimension_numbers = #tpu.dot_dimension_numbers<[1], [0], [0], [1], [0, 0, 1, 1], [], []>} : vector<16x32xbf16>, vector<32x32xbf16>, vector<16x32xf32> -> vector<16x32xf32>
    %5 = vector.extract_strided_slice %1 {offsets = [0, 0], sizes = [1, 32], strides = [1, 1]} : vector<1x128xf32> to vector<1x32xf32>
    %6 = vector.broadcast %5 : vector<1x32xf32> to vector<16x32xf32>
    %7 = arith.addf %4, %6 : vector<16x32xf32>
    %8 = arith.truncf %7 : vector<16x32xf32> to vector<16x32xbf16>
    %9 = vector.extract_strided_slice %0 {offsets = [0, 32], sizes = [32, 96], strides = [1, 1]} : vector<32x128xbf16> to vector<32x96xbf16>
    %cst_5 = arith.constant dense<0.000000e+00> : vector<16x96xf32>
    %10 = tpu.matmul %8, %9, %cst_5 {dimension_numbers = #tpu.dot_dimension_numbers<[1], [0], [0], [1], [0, 0, 1, 1], [], []>} : vector<16x32xbf16>, vector<32x96xbf16>, vector<16x96xf32> -> vector<16x96xf32>
    %11 = vector.extract_strided_slice %1 {offsets = [0, 32], sizes = [1, 96], strides = [1, 1]} : vector<1x128xf32> to vector<1x96xf32>
    %12 = vector.broadcast %11 : vector<1x96xf32> to vector<16x96xf32>
    %13 = arith.addf %10, %12 : vector<16x96xf32>
    %14 = vector.extract_strided_slice %13 {offsets = [0, 0], sizes = [8, 96], strides = [1, 1]} : vector<16x96xf32> to vector<8x96xf32>
    %15 = vector.extract_strided_slice %14 {offsets = [0, 0], sizes = [8, 32], strides = [1, 1]} : vector<8x96xf32> to vector<8x32xf32>
    %16 = arith.truncf %15 : vector<8x32xf32> to vector<8x32xbf16>
    %17 = vector.extract_strided_slice %14 {offsets = [0, 32], sizes = [8, 32], strides = [1, 1]} : vector<8x96xf32> to vector<8x32xf32>
    %18 = arith.truncf %17 : vector<8x32xf32> to vector<8x32xbf16>
    %19 = vector.extract_strided_slice %14 {offsets = [0, 64], sizes = [8, 32], strides = [1, 1]} : vector<8x96xf32> to vector<8x32xf32>
    %cst_6 = arith.constant dense<0.000000e+00> : vector<8x8xf32>
    %20 = tpu.matmul %18, %16, %cst_6 {dimension_numbers = #tpu.dot_dimension_numbers<[1], [1], [0], [0], [0, 0, 1, 0], [], []>} : vector<8x32xbf16>, vector<8x32xbf16>, vector<8x8xf32> -> vector<8x8xf32>
    %21 = vector.extract_strided_slice %13 {offsets = [8, 0], sizes = [8, 96], strides = [1, 1]} : vector<16x96xf32> to vector<8x96xf32>
    %22 = vector.extract_strided_slice %21 {offsets = [0, 0], sizes = [8, 32], strides = [1, 1]} : vector<8x96xf32> to vector<8x32xf32>
    %23 = arith.truncf %22 : vector<8x32xf32> to vector<8x32xbf16>
    %24 = vector.extract_strided_slice %21 {offsets = [0, 32], sizes = [8, 32], strides = [1, 1]} : vector<8x96xf32> to vector<8x32xf32>
    %25 = arith.truncf %24 : vector<8x32xf32> to vector<8x32xbf16>
    %26 = vector.extract_strided_slice %21 {offsets = [0, 64], sizes = [8, 32], strides = [1, 1]} : vector<8x96xf32> to vector<8x32xf32>
    %cst_7 = arith.constant dense<0.000000e+00> : vector<8x8xf32>
    %27 = tpu.matmul %25, %23, %cst_7 {dimension_numbers = #tpu.dot_dimension_numbers<[1], [1], [0], [0], [0, 0, 1, 0], [], []>} : vector<8x32xbf16>, vector<8x32xbf16>, vector<8x8xf32> -> vector<8x8xf32>
    %28 = arith.maximumf %20, %27 : vector<8x8xf32>
    %29 = arith.subf %20, %28 : vector<8x8xf32>
    %30 = math.exp %29 : vector<8x8xf32>
    %31 = arith.subf %27, %28 : vector<8x8xf32>
    %32 = math.exp %31 : vector<8x8xf32>
    %33 = arith.addf %30, %32 : vector<8x8xf32>
    %34 = tpu.reciprocal %33 {approx = true} : vector<8x8xf32> -> vector<8x8xf32>
    %35 = arith.mulf %30, %34 : vector<8x8xf32>
    %36 = arith.truncf %35 : vector<8x8xf32> to vector<8x8xbf16>
    %37 = arith.truncf %19 : vector<8x32xf32> to vector<8x32xbf16>
    %cst_8 = arith.constant dense<0.000000e+00> : vector<8x32xf32>
    %38 = tpu.matmul %36, %37, %cst_8 {dimension_numbers = #tpu.dot_dimension_numbers<[1], [0], [0], [1], [0, 0, 1, 1], [], []>} : vector<8x8xbf16>, vector<8x32xbf16>, vector<8x32xf32> -> vector<8x32xf32>
    %c0_9 = arith.constant 0 : index
    %c0_10 = arith.constant 0 : index
    %c0_11 = arith.constant 0 : index
    %39 = vector.load %arg3[%c0_9, %c0_10, %c0_11] : memref<2x8x32xf32, #tpu.memory_space<vmem>>, vector<1x8x32xf32>
    %40 = vector.shape_cast %39 : vector<1x8x32xf32> to vector<8x32xf32>
    %41 = vector.shape_cast %38 : vector<8x32xf32> to vector<1x8x32xf32>
    tpu.vector_store %arg3[%c0_9, %c0_10, %c0_11], %41 {strides = array<i32>} : memref<2x8x32xf32, #tpu.memory_space<vmem>>, vector<1x8x32xf32>,
    %42 = arith.mulf %32, %34 : vector<8x8xf32>
    %43 = arith.truncf %42 : vector<8x8xf32> to vector<8x8xbf16>
    %44 = arith.truncf %26 : vector<8x32xf32> to vector<8x32xbf16>
    %cst_12 = arith.constant dense<0.000000e+00> : vector<8x32xf32>
    %45 = tpu.matmul %43, %44, %cst_12 {dimension_numbers = #tpu.dot_dimension_numbers<[1], [0], [0], [1], [0, 0, 1, 1], [], []>} : vector<8x8xbf16>, vector<8x32xbf16>, vector<8x32xf32> -> vector<8x32xf32>
    %c1 = arith.constant 1 : index
    %c0_13 = arith.constant 0 : index
    %c0_14 = arith.constant 0 : index
    %46 = vector.load %arg3[%c1, %c0_13, %c0_14] : memref<2x8x32xf32, #tpu.memory_space<vmem>>, vector<1x8x32xf32>
    %47 = vector.shape_cast %46 : vector<1x8x32xf32> to vector<8x32xf32>
    %48 = vector.shape_cast %45 : vector<8x32xf32> to vector<1x8x32xf32>
    tpu.vector_store %arg3[%c1, %c0_13, %c0_14], %48 {strides = array<i32>} : memref<2x8x32xf32, #tpu.memory_space<vmem>>, vector<1x8x32xf32>,
    return
  }
}

</mosaic_0001>

<bundles_post_ra>
// kernel: self_attention_forward.1
= control target key start
LH: loop header
LB: loop body
LE: loop exit
PB: predicated region body
PF: predicated region fallthrough
CT: control target
= control target key end

     0   :  { %s324_s0 = inlined_call_operand.vmem [shape: bf16[16,32], index: 0, kind: input, shape index: {}]   ;;  %s325_s1 = inlined_call_operand.vmem [shape: bf16[32,128], index: 1, kind: input, shape index: {}]   ;;  %s326_s2 = inlined_call_operand.vmem [shape: f32[1,128], index: 2, kind: input, shape index: {}]   ;;  %s327_s3 = inlined_call_operand.hbm [shape: f32[2,8,32], index: 3, kind: output, shape index: {}]  }
   0x1   :  { %v231_v0 = vld [vmem:[%s325_s1 + $0x8] sm:$0xff]  ;;  %v238_v1 = vld [vmem:[%s326_s2] ss:$0 sm:$0xff] }
   0x2   :  { %8 = vsyncpa [#allocation3], 0  ;;  %53 = vmatpush.bf16.msra.mxu0 %v231_v0  ;;  %v230_v2 = vld [vmem:[%s325_s1] sm:$0xff]  ;;  %s271_s18 = smov 96   ;;  %vm43_vm0 = vcmask 261120   ;;  %vm151_vm1 = vcmask 1043456  }
   0x3   :  { %64 = vrot.lane.b32.xlu0 %v231_v0, %s271_s18  ;;  %68 = vrot.lane.b32.xlu1 %v238_v1, %s271_s18  ;;  %v232_v3 = vld [vmem:[%s324_s0] sm:$0xff]  ;;  %s272_s0 = smov 64   ;;  %vm147_vm2 = vcmask 64512   ;;  %s273_s1 = smov [#allocation2]  }
   0x4   :  { %s198_s2 = sshll.u32 %s273_s1, 4  ;;  %s200_s23 = sshll.u32 %s327_s3, 4  ;;  %s199_s2 = int_to_ptr.vmem [resolvable:$true] %s198_s2  ;;  %s201_s23 = int_to_ptr.hbm [resolvable:$true] %s200_s23 }
   0x5   :  { %s274_s24 = smov 128   ;;  %s275_s25 = smov 8  }
   0x6   :  { %54 = vmatpush.bf16.msra.mxu0 %v230_v2 }
   0x9   :  { %224 = vmatmul.msk.bf16.vlgmr.msra.gmra.mxu0 %vm43_vm0, %v232_v3 }
   0xb   :  { %62 = vrot.lane.b32.xlu0 %v230_v2, %s271_s18 }
  0x75   :  { %v65_v4 = vpop.permute.xlu0 %64  ;;  %v69_v11 = vpop.permute.xlu1 %68 }
  0x76   :  { %80 = vmatpush.bf16.msra.mxu1 %v65_v4 }
  0x7d   :  { %v63_v5 = vpop.permute.xlu0 %62 }
  0x7e   :  { %81 = vmatpush.bf16.msra.mxu1 %v63_v5 }
  0x86   :  { %v56_v6 = vpop.f32.mrf.mxu0 }
  0x87   :  { %v57_v8 = vadd.f32 %v238_v1, %v56_v6 }
  0x8e   :  { %v58_v7 = vpop.f32.mrf.mxu0 }
  0x8f   :  { %v59_v9 = vadd.f32 %v238_v1, %v58_v7 }
  0x91   :  { %v61_v10 = vpack.c.bf16 %v59_v9, %v57_v8 }
  0x93   :  { %225 = vmatmul.msk.bf16.vlgmr.msra.gmra.mxu1 %vm43_vm0, %v61_v10 }
 0x110   :  { %v83_v12 = vpop.f32.mrf.mxu1 }
 0x111   :  { %v84_v13 = vadd.f32 %v83_v12, %v69_v11 }
 0x113   :  { %v88_v14 = vpack.c.bf16 %v84_v13, %v84_v13 }
 0x115   :  { %90 = vrot.lane.b32.xlu1 %v88_v14, %s271_s18  ;;  %v96_v15 = vsel %vm43_vm0, %v88_v14, 0 }
 0x116   :  { %105 = vmatpush.bf16.xpose.msra.mxu2 %v96_v15 }
 0x118   :  { %v85_v16 = vpop.f32.mrf.mxu1 }
 0x119   :  { %v86_v17 = vadd.f32 %v85_v16, %v69_v11 }
 0x11b   :  { %v111_v18 = vpack.c.bf16 %v86_v17, %v86_v17 }
 0x11d   :  { %171 = vrot.lane.b32.xlu0 %v111_v18, %s272_s0  ;;  %113 = vrot.lane.b32.xlu2 %v111_v18, %s271_s18  ;;  %v119_v19 = vsel %vm43_vm0, %v111_v18, 0 }
 0x11e   :  { %128 = vmatpush.bf16.xpose.msra.mxu3 %v119_v19 }
 0x125   :  { %145 = vrot.lane.b32.xlu2 %v88_v14, %s272_s0 }
 0x177   :  { %v114_v20 = vpop.permute.xlu2 %113 }
 0x178   :  { %227 = vmatmul.msk.bf16.vlgmr.msra.gmra.mxu3 %vm43_vm0, %v114_v20 }
 0x17f   :  { %v146_v21 = vpop.permute.xlu2 %145 }
 0x180   :  { %v153_v22 = vsel %vm151_vm1, %v146_v21, 0 }
 0x181   :  { %162 = vmatpush.bf16.msrb.mxu0 %v153_v22 }
 0x187   :  { %v91_v23 = vpop.permute.xlu1 %90 }
 0x188   :  { %226 = vmatmul.msk.bf16.vlgmr.msra.gmra.mxu2 %vm43_vm0, %v91_v23 }
 0x18f   :  { %v172_v24 = vpop.permute.xlu0 %171 }
 0x190   :  { %v177_v25 = vsel %vm151_vm1, %v172_v24, 0 }
 0x191   :  { %186 = vmatpush.bf16.msrb.mxu1 %v177_v25 }
 0x1fb   :  { %v130_v26 = vpop.f32.mrf.mxu3 }
 0x203   :  { %v132_v27 = vpop.f32.mrf.mxu3 }
 0x20b   :  { %v107_v28 = vpop.f32.mrf.mxu2 }
 0x20c   :  { %v134_v29 = vmax.f32 %v107_v28, %v130_v26 }
 0x20e   :  { %v135_v30 = vsub.f32 %v107_v28, %v134_v29  ;;  %v138_v31 = vsub.f32 %v130_v26, %v134_v29 }
 0x210   :  { %v136_v32 = vmul.f32 1.442695, %v135_v30  ;;  %v139_v33 = vmul.f32 1.442695, %v138_v31 }
 0x212   :  { %239 = vpow2.f32 %v136_v32 }
 0x213   :  { %241 = vpow2.f32 %v139_v33  ;;  %v109_v34 = vpop.f32.mrf.mxu2 }
 0x218   :  { %v240_v35 = vpop.eup %239 }
 0x219   :  { %v242_v36 = vpop.eup %241 }
 0x21a   :  { %v141_v37 = vadd.f32 %v242_v36, %v240_v35 }
 0x21c   :  { %243 = vrcp.f32 %v141_v37 }
 0x222   :  { %v244_v38 = vpop.eup %243 }
 0x223   :  { %v143_v39 = vmul.f32 %v244_v38, %v240_v35  ;;  %v169_v40 = vmul.f32 %v244_v38, %v242_v36 }
 0x225   :  { %v144_v41 = vpack.c.bf16 %v143_v39, %v143_v39  ;;  %v170_v42 = vpack.c.bf16 %v169_v40, %v169_v40 }
 0x227   :  { %228 = vmatmul.msk.bf16.vlgmr.msrb.gmra.mxu0 %vm147_vm2, %v144_v41  ;;  %229 = vmatmul.msk.bf16.vlgmr.msrb.gmra.mxu1 %vm147_vm2, %v170_v42 }
 0x2a4   :  { %v164_v43 = vpop.f32.mrf.mxu0  ;;  %v188_v44 = vpop.f32.mrf.mxu1 }
 0x2a5   :  { %168 = vst.msk [vmem:[#allocation2] sm:$0xff] %vm43_vm0, %v164_v43 }
 0x2a6   :  { %193 = vst.msk [vmem:[#allocation2 + $0x8] sm:$0xff] %vm43_vm0, %v188_v44 }
 0x2a7   :  { %206 = dma.vmem_to_hbm [thread:$0]  %s199_s2, 256, %s201_s23, [#allocation3], %s274_s24, %s274_s24, %s275_s25  }
 0x2ac   :  { %v166_v45 = vpop.f32.mrf.mxu0  ;;  %v190_v46 = vpop.f32.mrf.mxu1 }
 0x2ad   :  { %269 = dma.done.wait [#allocation3], 256  }
 0x2ae   :  { %270 = vsyncadd [#allocation3], 4294967040 }
 0x2af   :  { %211 = vsyncpa [#allocation3], 1 }

</bundles_post_ra>
